<compile_context>
chip_gen: v7x
topology: tpu7x:2x2x1
jax: 0.10.0
libtpu: 0.0.40
codegen_flags: <defaults>
</compile_context>

<pallas_src>
import functools
import math

import jax
import jax.numpy as jnp
from jax.experimental import pallas as pl
from jax.experimental.pallas import tpu as pltpu


_BIG = 1e30  # ||w||^2 value for padded (never-selected) codebook rows


def _round_up(x, m):
    return ((x + m - 1) // m) * m


def _cdiv(a, b):
    return -(-a // b)


def _choose_tm(n_rows, block_rows):
    """Row-tile size: big tiles to amortize per-step overhead, >=2 tiles for
    the 2-TensorCore parts, multiple of 128 when large (lane-dense stores)."""
    tm = _round_up(min(block_rows, _round_up(n_rows, 8)), 8)
    if n_rows > 8 and _cdiv(n_rows, tm) < 2:
        tm = _round_up(_cdiv(n_rows, 2), 8)
    if tm >= 128:
        tm = _round_up(tm, 128)
    return max(tm, 8)


def _vq_kernel(z_ref, wc_ref, wghi_ref, wglo_ref, w2_ref, iota_ref,
               zq_ref, idx_ref, loss_ref, *, beta, nbooks, n_e_pad):
    """One row-tile of the split-codebook VQ forward (fully fused matmuls).

    z_ref    : (tm, e_dim)             activations
    wc_ref   : (e_dim, nbooks*n_e_pad) block-diagonal bf16 codebook (cross term)
    wghi_ref : (nbooks*n_e_pad, e_dim) bf16 hi part of the gather matrix
    wglo_ref : (nbooks*n_e_pad, e_dim) bf16 lo part of the gather matrix
    w2_ref   : (1, nbooks*n_e_pad)     f32 ||w||^2 (+BIG on padded codes)
    iota_ref : (nbooks, nbooks*n_e_pad) f32 block-diagonal local code index
    outputs  : zq (tm, e_dim), idx (1, nbooks, tm) lane-major, loss (1, 1, tm)
    """
    tm, e_dim = z_ref.shape

    z_nat = z_ref[...]
    z_mm = z_nat.astype(jnp.bfloat16)      # matmul operand (no-op if bf16 input)
    z_f32 = z_nat.astype(jnp.float32)      # residual / loss path (no-op if f32)

    # All cross terms in ONE MXU matmul against the block-diagonal codebook:
    # cross[:, j*n_e_pad + k] = <z[:, off_j:off_j+d_j], w_j[k]>.
    cross = jax.lax.dot_general(
        z_mm, wc_ref[...],
        dimension_numbers=(((1,), (0,)), ((), ())),
        preferred_element_type=jnp.float32)              # (tm, nbooks*n_e_pad)

    # argmin_k ||z - w_k||^2 == argmin_k (||w_k||^2 - 2 z.w_k): ||z||^2 dropped.
    dist = w2_ref[...] - 2.0 * cross                     # f32

    # Per-book argmin over a 128-aligned lane slice; the fused one-hot is built
    # directly in the (tm, nbooks*n_e_pad) layout used by the gather matmul.
    lane_iota = jax.lax.broadcasted_iota(jnp.int32, (tm, n_e_pad), 1)
    hots = []
    for j in range(nbooks):                              # nbooks small & static
        d_j = dist[:, j * n_e_pad:(j + 1) * n_e_pad]
        idx_j = jnp.argmin(d_j, axis=1)                  # (tm,), first min
        hots.append((lane_iota == idx_j[:, None]).astype(jnp.float32))
    one_hot = jnp.concatenate(hots, axis=-1)             # (tm, nbooks*n_e_pad) f32
    oh_bf = one_hot.astype(jnp.bfloat16)                 # exact (values 0/1)

    # Fused codeword gather: one_hot @ block-diag W as a hi/lo bf16 split
    # (2 MXU passes; one_hot is exact in bf16 so q ~ f32-exact codewords).
    q = jax.lax.dot_general(oh_bf, wghi_ref[...],
                            dimension_numbers=(((1,), (0,)), ((), ())),
                            preferred_element_type=jnp.float32)
    q = q + jax.lax.dot_general(oh_bf, wglo_ref[...],
                                dimension_numbers=(((1,), (0,)), ((), ())),
                                preferred_element_type=jnp.float32)  # (tm, e_dim)

    # z_q = z + (z_q - z).detach() -> forward value is the quantized concat.
    zq_ref[...] = q.astype(zq_ref.dtype)

    # Lane-major indices: ONE (nbooks, N) block-diag-iota matvec (exact in f32).
    idx_lane = jax.lax.dot_general(iota_ref[...], one_hot,
                                   dimension_numbers=(((1,), (1,)), ((), ())),
                                   preferred_element_type=jnp.float32)  # (nbooks, tm)
    idx_ref[...] = idx_lane.astype(jnp.int32).reshape(1, nbooks, tm)

    # Lane-major per-row loss via ONE ones @ err^2 matvec:
    # loss = mean((zq-z)^2,-1) + beta*mean((zq-z)^2,-1) = (1+beta)/e_dim * SSE.
    err = z_f32 - q
    sse = jax.lax.dot_general(jnp.ones((1, e_dim), jnp.float32), err * err,
                              dimension_numbers=(((1,), (1,)), ((), ())),
                              preferred_element_type=jnp.float32)        # (1, tm)
    loss_ref[...] = ((1.0 + beta) / float(e_dim) * sse).reshape(1, 1, tm)


def vq_forward(z, codebooks, beta=0.25, block_rows=512):
    """VectorQuantizer forward (eval path: p == 1.0, balance=False).

    z         : (..., e_dim) float array.
    codebooks : list of nbooks arrays; book j has shape (n_e_i, d_j),
                sum(d_j) == e_dim (the nn.Embedding weights).
    Returns (z_q, loss, indices):
      z_q     : (..., e_dim) quantized values (straight-through value path)
      loss    : (...,)  = (1 + beta) * mean((z_q - z)^2, -1) per position
      indices : (..., nbooks) int32 code indices
    """
    e_dim = z.shape[-1]
    nbooks = len(codebooks)
    embed_dims = [int(w.shape[1]) for w in codebooks]
    assert sum(embed_dims) == e_dim, "codebook dims must sum to e_dim"
    n_e_i = int(codebooks[0].shape[0])
    assert all(int(w.shape[0]) == n_e_i for w in codebooks)

    batch_shape = z.shape[:-1]
    n_rows = math.prod(batch_shape)

    tm = _choose_tm(n_rows, block_rows)
    n_tiles = _cdiv(n_rows, tm)
    n_pad = n_tiles * tm

    z_flat = z.reshape(n_rows, e_dim)
    if n_pad != n_rows:
        z_flat = jnp.pad(z_flat, ((0, n_pad - n_rows), (0, 0)))

    # Pad each codebook to a multiple of 128 codes and fuse everything into
    # block-diagonal operands ONCE in the wrapper:
    #   w_cross (e_dim, n_tot) bf16, w_gather hi/lo (n_tot, e_dim) bf16,
    #   w2 (1, n_tot) f32 (+BIG on padded codes), iota (nbooks, n_tot) f32.
    n_e_pad = _round_up(max(n_e_i, 128), 128)
    assert n_e_pad < (1 << 24), "f32-exact index recovery needs n_e_pad < 2^24"
    n_tot = nbooks * n_e_pad

    w_cross = jnp.zeros((e_dim, n_tot), jnp.float32)
    w_gather = jnp.zeros((n_tot, e_dim), jnp.float32)
    w2 = jnp.full((1, n_tot), _BIG, jnp.float32)
    iota = jnp.zeros((nbooks, n_tot), jnp.float32)
    off = 0
    for j, w in enumerate(codebooks):
        w = w.astype(jnp.float32)
        d = embed_dims[j]
        c0 = j * n_e_pad
        w_cross = w_cross.at[off:off + d, c0:c0 + n_e_i].set(w.T)
        w_gather = w_gather.at[c0:c0 + n_e_i, off:off + d].set(w)
        w2 = w2.at[0, c0:c0 + n_e_i].set(jnp.sum(w * w, axis=1))
        iota = iota.at[j, c0:c0 + n_e_i].set(jnp.arange(n_e_i, dtype=jnp.float32))
        off += d
    w_cross_bf = w_cross.astype(jnp.bfloat16)
    w_hi = w_gather.astype(jnp.bfloat16)
    w_lo = (w_gather - w_hi.astype(jnp.float32)).astype(jnp.bfloat16)

    kernel = functools.partial(_vq_kernel, beta=float(beta),
                               nbooks=nbooks, n_e_pad=n_e_pad)

    in_specs = [
        pl.BlockSpec((tm, e_dim), lambda i: (i, 0)),         # z rows
        pl.BlockSpec((e_dim, n_tot), lambda i: (0, 0)),      # W_cross (bf16)
        pl.BlockSpec((n_tot, e_dim), lambda i: (0, 0)),      # W_gather hi (bf16)
        pl.BlockSpec((n_tot, e_dim), lambda i: (0, 0)),      # W_gather lo (bf16)
        pl.BlockSpec((1, n_tot), lambda i: (0, 0)),          # ||w||^2 (f32)
        pl.BlockSpec((nbooks, n_tot), lambda i: (0, 0)),     # block-diag iota
    ]
    out_specs = (
        pl.BlockSpec((tm, e_dim), lambda i: (i, 0)),
        pl.BlockSpec((1, nbooks, tm), lambda i: (i, 0, 0)),
        pl.BlockSpec((1, 1, tm), lambda i: (i, 0, 0)),
    )
    out_shape = (jax.ShapeDtypeStruct((n_pad, e_dim), z.dtype),
                 jax.ShapeDtypeStruct((n_tiles, nbooks, tm), jnp.int32),
                 jax.ShapeDtypeStruct((n_tiles, 1, tm), jnp.float32))

    itemsize = jnp.dtype(z.dtype).itemsize
    # VMEM budget: double-buffered blocks + f32 in-kernel temporaries, clamped
    # to [32 MiB, 48 MiB] (v7x only has 64 MiB of VMEM per TensorCore).
    block_bytes = (2 * tm * e_dim * itemsize                 # z in + zq out
                   + 2 * (e_dim * n_tot + 2 * n_tot * e_dim)  # bf16 weights
                   + 4 * (n_tot + nbooks * n_tot)             # w2 + iota
                   + 4 * (nbooks * tm + tm))                  # idx + loss out
    tmp_bytes = 4 * tm * n_tot * 5 + 4 * tm * e_dim * 4
    est = 2 * block_bytes + tmp_bytes + (4 << 20)
    vmem_limit = int(min(max(est, 32 << 20), 48 << 20))

    cost = pl.CostEstimate(
        flops=int(6 * n_pad * e_dim * n_tot),                # cross + 2 gather passes
        transcendentals=0,
        bytes_accessed=int(2 * n_pad * e_dim * itemsize
                           + n_pad * (nbooks + 1) * 4
                           + 2 * 3 * e_dim * n_tot + 4 * (nbooks + 1) * n_tot))

    zq_pad, idx_tiles, loss_tiles = pl.pallas_call(
        kernel,
        out_shape=out_shape,
        grid=(n_tiles,),
        in_specs=in_specs,
        out_specs=out_specs,
        compiler_params=pltpu.CompilerParams(
            dimension_semantics=("parallel",),   # independent row tiles
            vmem_limit_bytes=vmem_limit),
        cost_estimate=cost,
    )(z_flat, w_cross_bf, w_hi, w_lo, w2, iota)

    z_q = zq_pad[:n_rows].reshape(*batch_shape, e_dim)
    indices = (jnp.transpose(idx_tiles, (0, 2, 1))
               .reshape(n_pad, nbooks)[:n_rows]
               .reshape(*batch_shape, nbooks))
    loss = loss_tiles.reshape(n_pad)[:n_rows].reshape(batch_shape)
    return z_q, loss, indices


def _vq_reference(z, codebooks, beta=0.25, matmul_dtype=jnp.bfloat16):
    """Pure-JAX mirror of the PyTorch forward (p == 1.0, balance=False).

    Uses the same bf16-operand distance matmul as the kernel so argmin decisions
    match deterministically (bf16 vs f32 distances can differ on near-ties)."""
    e_dim = z.shape[-1]
    flat = z.reshape(-1, e_dim).astype(jnp.float32)
    q_parts, idx_parts = [], []
    off = 0
    for w in codebooks:
        w = w.astype(jnp.float32)
        d = w.shape[1]
        z_j = flat[:, off:off + d]
        w2 = jnp.sum(w * w, axis=1)
        cross = jax.lax.dot_general(
            z_j.astype(matmul_dtype), w.astype(matmul_dtype),
            dimension_numbers=(((1,), (1,)), ((), ())),
            preferred_element_type=jnp.float32)
        dist = w2[None, :] - 2.0 * cross
        idx = jnp.argmin(dist, axis=1)
        q_parts.append(w[idx])
        idx_parts.append(idx.astype(jnp.int32))
        off += d
    z_q = jnp.concatenate(q_parts, axis=-1).reshape(z.shape)
    loss = (1.0 + beta) * jnp.mean((z_q - z.astype(jnp.float32)) ** 2, axis=-1)
    indices = jnp.stack(idx_parts, axis=-1).reshape(*z.shape[:-1], len(codebooks))
    return z_q.astype(z.dtype), loss, indices


if __name__ == "__main__":
    # Small shapes consistent with the module: z is [batch, seq, e_dim].
    n_e, e_dim, beta, nbooks = 64, 32, 0.25, 2
    batch, seq = 2, 10
    n_e_i = n_e // nbooks
    bsize = e_dim // nbooks
    embed_dims = (nbooks - 1) * [bsize] + [e_dim - (nbooks - 1) * bsize]

    root = jax.random.PRNGKey(0)
    kz, kw = jax.random.split(root)
    z = jax.random.normal(kz, (batch, seq, e_dim), jnp.float32)

    # nn.Embedding weights, init uniform(-1/n_e_i, 1/n_e_i) as in the module.
    wkeys = jax.random.split(kw, nbooks)
    codebooks = [jax.random.uniform(wkeys[i], (n_e_i, embed_dims[i]),
                                    jnp.float32, -1.0 / n_e_i, 1.0 / n_e_i)
                 for i in range(nbooks)]

    # Default block_rows=512; the tm heuristic still yields a 2-tile grid for
    # these 20 rows, exercising the pipelined / megacore-shardable path.
    z_q, loss, indices = vq_forward(z, codebooks, beta=beta)
    jax.block_until_ready((z_q, loss, indices))

    # Sanity check against the pure-JAX reference.
    z_q_r, loss_r, idx_r = _vq_reference(z, codebooks, beta=beta)
    assert z_q.shape == (batch, seq, e_dim)
    assert loss.shape == (batch, seq)
    assert indices.shape == (batch, seq, nbooks)
    assert jnp.allclose(z_q, z_q_r, atol=1e-5, rtol=1e-5)
    assert jnp.allclose(loss, loss_r, atol=3e-5, rtol=3e-5)
    assert jnp.array_equal(indices, idx_r)

    print("KERNEL_OK")
</pallas_src>

<mosaic_0001>
module attributes {stable_mosaic.version = 11 : i64} {
  func.func @_vq_kernel(%arg0: i32, %arg1: memref<16x32xf32, #tpu.memory_space<vmem>>, %arg2: memref<32x256xbf16, #tpu.memory_space<vmem>>, %arg3: memref<256x32xbf16, #tpu.memory_space<vmem>>, %arg4: memref<256x32xbf16, #tpu.memory_space<vmem>>, %arg5: memref<1x256xf32, #tpu.memory_space<vmem>>, %arg6: memref<2x256xf32, #tpu.memory_space<vmem>>, %arg7: memref<16x32xf32, #tpu.memory_space<vmem>>, %arg8: memref<1x2x16xi32, #tpu.memory_space<vmem>>, %arg9: memref<1x1x16xf32, #tpu.memory_space<vmem>>) attributes {dimension_semantics = [#tpu.dimension_semantics<parallel>], iteration_bounds = array<i64: 2>, scalar_prefetch = 0 : i64, scratch_operands = 0 : i64, tpu.core_type = #tpu.core_type<tc>, window_params = [{transform_indices = @transform_0, window_bounds = array<i64: 16, 32>}, {pipeline_mode = #tpu.pipeline_mode<synchronous>, transform_indices = @transform_1, window_bounds = array<i64: 32, 256>}, {pipeline_mode = #tpu.pipeline_mode<synchronous>, transform_indices = @transform_2, window_bounds = array<i64: 256, 32>}, {pipeline_mode = #tpu.pipeline_mode<synchronous>, transform_indices = @transform_3, window_bounds = array<i64: 256, 32>}, {pipeline_mode = #tpu.pipeline_mode<synchronous>, transform_indices = @transform_4, window_bounds = array<i64: 1, 256>}, {pipeline_mode = #tpu.pipeline_mode<synchronous>, transform_indices = @transform_5, window_bounds = array<i64: 2, 256>}, {transform_indices = @transform_6, window_bounds = array<i64: 16, 32>}, {transform_indices = @transform_7, window_bounds = array<i64: 1, 2, 16>}, {transform_indices = @transform_8, window_bounds = array<i64: 1, 1, 16>}]} {
    %c0 = arith.constant 0 : index
    %c0_0 = arith.constant 0 : index
    %0 = vector.load %arg1[%c0, %c0_0] : memref<16x32xf32, #tpu.memory_space<vmem>>, vector<16x32xf32>
    %1 = arith.truncf %0 : vector<16x32xf32> to vector<16x32xbf16>
    %c0_1 = arith.constant 0 : index
    %c0_2 = arith.constant 0 : index
    %2 = vector.load %arg2[%c0_1, %c0_2] : memref<32x256xbf16, #tpu.memory_space<vmem>>, vector<32x256xbf16>
    %cst = arith.constant dense<0.000000e+00> : vector<16x256xf32>
    %3 = tpu.matmul %1, %2, %cst {dimension_numbers = #tpu.dot_dimension_numbers<[1], [0], [0], [1], [0, 0, 1, 1], [], []>} : vector<16x32xbf16>, vector<32x256xbf16>, vector<16x256xf32> -> vector<16x256xf32>
    %c0_3 = arith.constant 0 : index
    %c0_4 = arith.constant 0 : index
    %4 = vector.load %arg5[%c0_3, %c0_4] : memref<1x256xf32, #tpu.memory_space<vmem>>, vector<1x256xf32>
    %cst_5 = arith.constant 2.000000e+00 : f32
    %5 = vector.broadcast %cst_5 : f32 to vector<16x256xf32>
    %6 = arith.mulf %5, %3 : vector<16x256xf32>
    %7 = vector.broadcast %4 : vector<1x256xf32> to vector<16x256xf32>
    %8 = arith.subf %7, %6 : vector<16x256xf32>
    %9 = tpu.iota {dimensions = array<i32: 1>} : vector<16x128xi32>
    %10 = vector.extract_strided_slice %8 {offsets = [0, 0], sizes = [16, 128], strides = [1, 1]} : vector<16x256xf32> to vector<16x128xf32>
    %11 = tpu.reduce_index %10 {axis = 1 : i32, kind = #tpu.reduction_kind<arg_min>} : vector<16x128xf32> -> vector<16xi32>
    %12 = vector.shape_cast %11 : vector<16xi32> to vector<16x1xi32>
    %13 = vector.broadcast %12 : vector<16x1xi32> to vector<16x128xi32>
    %14 = arith.cmpi eq, %9, %13 : vector<16x128xi32>
    %15 = arith.extui %14 : vector<16x128xi1> to vector<16x128xi32>
    %16 = arith.sitofp %15 : vector<16x128xi32> to vector<16x128xf32>
    %17 = vector.extract_strided_slice %8 {offsets = [0, 128], sizes = [16, 128], strides = [1, 1]} : vector<16x256xf32> to vector<16x128xf32>
    %18 = tpu.reduce_index %17 {axis = 1 : i32, kind = #tpu.reduction_kind<arg_min>} : vector<16x128xf32> -> vector<16xi32>
    %19 = vector.shape_cast %18 : vector<16xi32> to vector<16x1xi32>
    %20 = vector.broadcast %19 : vector<16x1xi32> to vector<16x128xi32>
    %21 = arith.cmpi eq, %9, %20 : vector<16x128xi32>
    %22 = arith.extui %21 : vector<16x128xi1> to vector<16x128xi32>
    %23 = arith.sitofp %22 : vector<16x128xi32> to vector<16x128xf32>
    %24 = tpu.concatenate %16, %23 in 1 : vector<16x128xf32>, vector<16x128xf32> -> vector<16x256xf32>
    %25 = arith.truncf %24 : vector<16x256xf32> to vector<16x256xbf16>
    %c0_6 = arith.constant 0 : index
    %c0_7 = arith.constant 0 : index
    %26 = vector.load %arg3[%c0_6, %c0_7] : memref<256x32xbf16, #tpu.memory_space<vmem>>, vector<256x32xbf16>
    %cst_8 = arith.constant dense<0.000000e+00> : vector<16x32xf32>
    %27 = tpu.matmul %25, %26, %cst_8 {dimension_numbers = #tpu.dot_dimension_numbers<[1], [0], [0], [1], [0, 0, 1, 1], [], []>} : vector<16x256xbf16>, vector<256x32xbf16>, vector<16x32xf32> -> vector<16x32xf32>
    %c0_9 = arith.constant 0 : index
    %c0_10 = arith.constant 0 : index
    %28 = vector.load %arg4[%c0_9, %c0_10] : memref<256x32xbf16, #tpu.memory_space<vmem>>, vector<256x32xbf16>
    %cst_11 = arith.constant dense<0.000000e+00> : vector<16x32xf32>
    %29 = tpu.matmul %25, %28, %cst_11 {dimension_numbers = #tpu.dot_dimension_numbers<[1], [0], [0], [1], [0, 0, 1, 1], [], []>} : vector<16x256xbf16>, vector<256x32xbf16>, vector<16x32xf32> -> vector<16x32xf32>
    %30 = arith.addf %27, %29 : vector<16x32xf32>
    %c0_12 = arith.constant 0 : index
    %c0_13 = arith.constant 0 : index
    %31 = vector.load %arg7[%c0_12, %c0_13] : memref<16x32xf32, #tpu.memory_space<vmem>>, vector<16x32xf32>
    tpu.vector_store %arg7[%c0_12, %c0_13], %30 {strides = array<i32>} : memref<16x32xf32, #tpu.memory_space<vmem>>, vector<16x32xf32>,
    %c0_14 = arith.constant 0 : index
    %c0_15 = arith.constant 0 : index
    %32 = vector.load %arg6[%c0_14, %c0_15] : memref<2x256xf32, #tpu.memory_space<vmem>>, vector<2x256xf32>
    %cst_16 = arith.constant dense<0.000000e+00> : vector<2x16xf32>
    %33 = tpu.matmul %32, %24, %cst_16 {dimension_numbers = #tpu.dot_dimension_numbers<[1], [1], [0], [0], [0, 0, 1, 0], [], []>} : vector<2x256xf32>, vector<16x256xf32>, vector<2x16xf32> -> vector<2x16xf32>
    %34 = arith.fptosi %33 : vector<2x16xf32> to vector<2x16xi32>
    %35 = vector.shape_cast %34 : vector<2x16xi32> to vector<1x2x16xi32>
    %c0_17 = arith.constant 0 : index
    %c0_18 = arith.constant 0 : index
    %c0_19 = arith.constant 0 : index
    %36 = vector.load %arg8[%c0_17, %c0_18, %c0_19] : memref<1x2x16xi32, #tpu.memory_space<vmem>>, vector<1x2x16xi32>
    tpu.vector_store %arg8[%c0_17, %c0_18, %c0_19], %35 {strides = array<i32>} : memref<1x2x16xi32, #tpu.memory_space<vmem>>, vector<1x2x16xi32>,
    %37 = arith.subf %0, %30 : vector<16x32xf32>
    %cst_20 = arith.constant 1.000000e+00 : f32
    %38 = vector.broadcast %cst_20 : f32 to vector<1x32xf32>
    %39 = arith.mulf %37, %37 : vector<16x32xf32>
    %cst_21 = arith.constant dense<0.000000e+00> : vector<1x16xf32>
    %40 = tpu.matmul %38, %39, %cst_21 {dimension_numbers = #tpu.dot_dimension_numbers<[1], [1], [0], [0], [0, 0, 1, 0], [], []>} : vector<1x32xf32>, vector<16x32xf32>, vector<1x16xf32> -> vector<1x16xf32>
    %cst_22 = arith.constant 3.906250e-02 : f32
    %41 = vector.broadcast %cst_22 : f32 to vector<1x16xf32>
    %42 = arith.mulf %41, %40 : vector<1x16xf32>
    %43 = vector.shape_cast %42 : vector<1x16xf32> to vector<1x1x16xf32>
    %c0_23 = arith.constant 0 : index
    %c0_24 = arith.constant 0 : index
    %c0_25 = arith.constant 0 : index
    %44 = vector.load %arg9[%c0_23, %c0_24, %c0_25] : memref<1x1x16xf32, #tpu.memory_space<vmem>>, vector<1x1x16xf32>
    tpu.vector_store %arg9[%c0_23, %c0_24, %c0_25], %43 {strides = array<i32>} : memref<1x1x16xf32, #tpu.memory_space<vmem>>, vector<1x1x16xf32>,
    return
  }
  func.func @transform_0(%arg0: i32) -> (i32, i32) {
    %c0_i32 = arith.constant 0 : i32
    %c0_i32_0 = arith.constant 0 : i32
    return %arg0, %c0_i32 : i32, i32
  }
  func.func @transform_1(%arg0: i32) -> (i32, i32) {
    %c0_i32 = arith.constant 0 : i32
    %c0_i32_0 = arith.constant 0 : i32
    %c0_i32_1 = arith.constant 0 : i32
    return %c0_i32, %c0_i32_0 : i32, i32
  }
  func.func @transform_2(%arg0: i32) -> (i32, i32) {
    %c0_i32 = arith.constant 0 : i32
    %c0_i32_0 = arith.constant 0 : i32
    %c0_i32_1 = arith.constant 0 : i32
    return %c0_i32, %c0_i32_0 : i32, i32
  }
  func.func @transform_3(%arg0: i32) -> (i32, i32) {
    %c0_i32 = arith.constant 0 : i32
    %c0_i32_0 = arith.constant 0 : i32
    %c0_i32_1 = arith.constant 0 : i32
    return %c0_i32, %c0_i32_0 : i32, i32
  }
  func.func @transform_4(%arg0: i32) -> (i32, i32) {
    %c0_i32 = arith.constant 0 : i32
    %c0_i32_0 = arith.constant 0 : i32
    %c0_i32_1 = arith.constant 0 : i32
    return %c0_i32, %c0_i32_0 : i32, i32
  }
  func.func @transform_5(%arg0: i32) -> (i32, i32) {
    %c0_i32 = arith.constant 0 : i32
    %c0_i32_0 = arith.constant 0 : i32
    %c0_i32_1 = arith.constant 0 : i32
    return %c0_i32, %c0_i32_0 : i32, i32
  }
  func.func @transform_6(%arg0: i32) -> (i32, i32) {
    %c0_i32 = arith.constant 0 : i32
    %c0_i32_0 = arith.constant 0 : i32
    return %arg0, %c0_i32 : i32, i32
  }
  func.func @transform_7(%arg0: i32) -> (i32, i32, i32) {
    %c0_i32 = arith.constant 0 : i32
    %c0_i32_0 = arith.constant 0 : i32
    %c0_i32_1 = arith.constant 0 : i32
    return %arg0, %c0_i32, %c0_i32_0 : i32, i32, i32
  }
  func.func @transform_8(%arg0: i32) -> (i32, i32, i32) {
    %c0_i32 = arith.constant 0 : i32
    %c0_i32_0 = arith.constant 0 : i32
    %c0_i32_1 = arith.constant 0 : i32
    return %arg0, %c0_i32, %c0_i32_0 : i32, i32, i32
  }
}

</mosaic_0001>

<bundles_post_ra>
// kernel: tpu_custom_call.1
= control target key start
LH: loop header
LB: loop body
LE: loop exit
PB: predicated region body
PF: predicated region fallthrough
CT: control target
= control target key end

     0   :  { %s1840_s0 = inlined_call_operand.vmem [shape: f32[32,32], index: 0, kind: input, shape index: {}]   ;;  %s1841_s1 = inlined_call_operand.vmem [shape: bf16[32,256], index: 1, kind: input, shape index: {}]   ;;  %s1842_s2 = inlined_call_operand.vmem [shape: bf16[256,32], index: 2, kind: input, shape index: {}]   ;;  %s1843_s3 = inlined_call_operand.vmem [shape: bf16[256,32], index: 3, kind: input, shape index: {}]   ;;  %s1844_s4 = inlined_call_operand.vmem [shape: f32[1,256], index: 4, kind: input, shape index: {}]   ;;  %s1845_s5 = inlined_call_operand.vmem [shape: f32[2,256], index: 5, kind: input, shape index: {}]   ;;  %s1846_s6 = inlined_call_operand.hbm [shape: f32[32,32], index: 6, kind: output, shape index: {0}]   ;;  %s1847_s7 = inlined_call_operand.hbm [shape: s32[2,2,16], index: 7, kind: output, shape index: {1}]   ;;  %s1848_s8 = inlined_call_operand.hbm [shape: f32[2,1,16], index: 8, kind: output, shape index: {2}]  }
   0x1   :  { %1850 = sst [smem:[#allocation9_spill]] %s1840_s0 }
   0x2   :  { %14 = vsyncpa [#allocation3], 0 }
   0x3   :  { %16 = vsyncpa [#allocation3 + $0x1], 0 }
   0x4   :  { %17 = vsyncpa [#allocation5], 0 }
   0x5   :  { %19 = vsyncpa [#allocation5 + $0x1], 0  ;;  %s1535_s27 = smov 0   ;;  %s1537_s28 = smov 0  }
   0x6   :  { %s1539_s29 = smov 0   ;;  %s1541_s30 = smov 0  }
   0x7 LB: > { %s1556_s9 = sadd.s32 4294967295, %s1477_s30   ;;  %s1849_s10 = sadd.s32 4294967294, %s1477_s30   ;;  %s1477_s30 = sphi %s1541_s30, %s1859_s30   ;;  %s1473_s29 = sphi %s1539_s29, %s1858_s29   ;;  %s1469_s28 = sphi %s1537_s28, %s1857_s28   ;;  %s1465_s27 = sphi %s1535_s27, %s1856_s27  }
   0x8   : > { %s1560_s11 = sadd.s32 1, %s1477_s30   ;;  %s163_s12 = sadd.s32 1, %s1473_s29 }
   0x9   : > { %s160_s13 = ssub.s32 %s1477_s30, %s1560_s11  ;;  %p173_p0 = scmp.ne.s32.totalorder %s1473_s29, %s1469_s28 }
   0xa   : > { %p161_p1 = scmp.eq.s32.totalorder %s160_s13, 0  ;;  %p174_p2 = scmp.eq.s32.totalorder %s1556_s9, 1 }
   0xb   : > { %p179_p3 = scmp.ne.s32.totalorder %s1469_s28, %s1465_s27  ;;  %p180_p4 = scmp.eq.s32.totalorder %s1849_s10, 1 }
   0xc   : > { %s1573_s14 = scalar_select %p161_p1, %s1473_s29, %s163_s12  }
   0xd   : > { %p1575_p5 = por %p174_p2, %p173_p0  ;;  %p1579_p6 = por %p180_p4, %p179_p3 }
   0xe   : > { %p1125_p7 = scmp.ge.s32.totalorder %s1477_s30, 1  ;;  %p274_p8 = scmp.lt.s32.totalorder %s1477_s30, 3 }
  0x10   : > { %p275_p9 = pnand %p1125_p7, %p274_p8 }
  0x11   : > { %v1317_v0 = vld [vmem:[%s1841_s1 + $0x4] ss:$8 sps:$4 sm:$0xff] (!%p275_p9)   ;;  %s1128_s19 = sshll.u32 (!%p275_p9), %s1556_s9, 1  ;;  %v1319_v1 = vld [vmem:[%s1841_s1] ss:$8 sps:$4 sm:$0xff] (!%p275_p9)   ;;  %v1479_v2 = vmov (!%p275_p9), 0   ;;  %v405_v36 = vlaneseq (!%p275_p9) }
  0x12   : > { %278 = sbr.rel (%p275_p9) target bundleno = 858 (0x35a), region = 44  ;;  %388 = vmatprep.mubr.bf16.mxu0 (!%p275_p9), %v1479_v2  ;;  %p318_p10 = scmp.lt.s32.totalorder (!%p275_p9), %s1128_s19, 3  ;;  %356 = vmatprep.subr.bf16.mxu0 (!%p275_p9), %v1317_v0  ;;  %v1320_v3 = vld [vmem:[%s1841_s1 + $0x14] ss:$8 sps:$4 sm:$0xff] (!%p275_p9)   ;;  %v1322_v4 = vld [vmem:[%s1841_s1 + $0x10] ss:$8 sps:$4 sm:$0xff] (!%p275_p9)  }
  0x13   : > { %357 = vmatpush1.bf16.msra.mxu0 (!%p275_p9), %v1319_v1  ;;  %s1853_s0 = sld [smem:[#allocation9_spill]] (!%p275_p9)  ;;  %vm352_vm0 = vcmask (!%p275_p9), 261120   ;;  %v1323_v8 = vld [vmem:[%s1843_s3 + $0x40] sm:$0xff] (!%p275_p9)   ;;  %v1325_v10 = vld [vmem:[%s1843_s3 + $0x48] sm:$0xff] (!%p275_p9)   ;;  %v1329_v15 = vld [vmem:[%s1843_s3 + $0x50] sm:$0xff] (!%p275_p9)   ;;  %v406_v37 = vshrl.u32 (!%p275_p9), %v405_v36, 7 }
  0x14   : > { %358 = vmatprep.subr.bf16.mxu0 (!%p275_p9), %v1320_v3  ;;  %v1324_v9 = vld [vmem:[%s1843_s3] sm:$0xff] (!%p275_p9)   ;;  %1196 = vmatprep.subr.bf16.mxu1 (!%p275_p9), %v1323_v8  ;;  %v1331_v13 = vld [vmem:[%s1842_s2 + $0x48] sm:$0xff] (!%p275_p9)   ;;  %v1335_v17 = vld [vmem:[%s1842_s2 + $0x50] sm:$0xff] (!%p275_p9)   ;;  %v420_v61 = vand.u32 (!%p275_p9), 127, %v405_v36  ;;  %v1480_v0 = vmov (!%p275_p9), 1.0|1.0  }
  0x15   : > { %v1327_v11 = vld [vmem:[%s1842_s2 + $0x40] sm:$0xff] (!%p275_p9)   ;;  %1197 = vmatpush3.bf16.msra.mxu1 (!%p275_p9), %v1324_v9  ;;  %v1326_v14 = vld [vmem:[%s1843_s3 + $0x8] sm:$0xff] (!%p275_p9)   ;;  %v1330_v18 = vld [vmem:[%s1843_s3 + $0x10] sm:$0xff] (!%p275_p9)   ;;  %v407_v38 = vsub.s32 (!%p275_p9), 0, %v406_v37  ;;  %v411_v40 = vsub.s32 (!%p275_p9), 1, %v406_v37  ;;  %v1481_v1 = vmov (!%p275_p9), 0.0|0.0  }
  0x16   : > { %v1328_v12 = vld [vmem:[%s1842_s2] sm:$0xff] (!%p275_p9)   ;;  %1198 = vmatprep.subr.bf16.mxu1 (!%p275_p9), %v1325_v10  ;;  %v1332_v16 = vld [vmem:[%s1842_s2 + $0x8] sm:$0xff] (!%p275_p9)   ;;  %v1333_v19 = vld [vmem:[%s1843_s3 + $0x58] sm:$0xff] (!%p275_p9)   ;;  %vm1482_vm7 = vmmov (!%p275_p9), 0   ;;  %vm866_vm9 = vcmask (!%p275_p9), 123904   ;;  %s959_s20 = sand.u32 (!%p275_p9), 1, %s1556_s9  }
  0x17   : > { %359 = vmatpush1.bf16.msra.mxu0 (!%p275_p9), %v1322_v4  ;;  %v1336_v20 = vld [vmem:[%s1842_s2 + $0x10] sm:$0xff] (!%p275_p9)   ;;  %v1339_v21 = vld [vmem:[%s1842_s2 + $0x58] sm:$0xff] (!%p275_p9)   ;;  %v1337_v23 = vld [vmem:[%s1843_s3 + $0x60] sm:$0xff] (!%p275_p9)   ;;  %v1483_v4 = vmov (!%p275_p9), 0.0   ;;  %s1737_s10 = scalar_lea.sflag (!%p275_p9), [#allocation5], %s959_s20 }
  0x18   : > { %1218 = vmatprep.subr.bf16.mxu0 (!%p275_p9), %v1327_v11  ;;  %v1334_v22 = vld [vmem:[%s1843_s3 + $0x18] sm:$0xff] (!%p275_p9)   ;;  %v1343_v25 = vld [vmem:[%s1842_s2 + $0x60] sm:$0xff] (!%p275_p9)   ;;  %v1341_v27 = vld [vmem:[%s1843_s3 + $0x68] sm:$0xff] (!%p275_p9)  }
  0x19   : > { %s1861_s19 = smov (!%p318_p10, %s1128_s19), 3  ;;  %1199 = vmatpush3.bf16.msra.mxu1 %v1326_v14  ;;  %v1340_v24 = vld [vmem:[%s1842_s2 + $0x18] sm:$0xff]   ;;  %v1338_v26 = vld [vmem:[%s1843_s3 + $0x20] sm:$0xff]   ;;  %v1347_v29 = vld [vmem:[%s1842_s2 + $0x68] sm:$0xff]  }
  0x1a   : > { %s1129_s26 = sshll.u32 %s1861_s19, 3  ;;  %1200 = vmatprep.subr.bf16.mxu1 %v1329_v15  ;;  %v1344_v28 = vld [vmem:[%s1842_s2 + $0x20] sm:$0xff]   ;;  %v1342_v30 = vld [vmem:[%s1843_s3 + $0x28] sm:$0xff]   ;;  %v1345_v31 = vld [vmem:[%s1843_s3 + $0x70] sm:$0xff]   ;;  %s1191_s19 = sshll.u32 %s1556_s9, 5 }
  0x1b   : > { %s321_s17 = scalar_lea.vmem %s1853_s0, %s1129_s26  ;;  %v1348_v32 = vld [vmem:[%s1842_s2 + $0x28] sm:$0xff]   ;;  %v1346_v33 = vld [vmem:[%s1843_s3 + $0x30] sm:$0xff]   ;;  %v1349_v34 = vld [vmem:[%s1843_s3 + $0x78] sm:$0xff]   ;;  %s1711_s26 = sand.u32 1, %s1469_s28  }
  0x1c   : > { %v1601_v5 = vld [vmem:[%s321_s17] sm:$0xff]  ;;  %v1603_v6 = vld [vmem:[%s321_s17 + $0x8] sm:$0xff]  ;;  %v1350_v35 = vld [vmem:[%s1843_s3 + $0x38] sm:$0xff]   ;;  %s1126_s12 = sshll.u32 %s1711_s26, 4  ;;  %s1127_s17 = sshll.u32 %s1711_s26, 1 }
  0x1d   : > { %v327_v7 = vpack.c.bf16 %v1603_v6, %v1601_v5  ;;  %1201 = vmatpush3.bf16.msra.mxu1 %v1330_v18  ;;  %v399_v39 = vld [vmem:[%s1844_s4] sm:$0x3]  ;;  %v1351_v55 = vld [vmem:[%s1842_s2 + $0x70] sm:$0xff]   ;;  %v1353_v57 = vld [vmem:[%s1842_s2 + $0x78] sm:$0xff]   ;;  %s1714_s13 = scalar_lea.vmem [#allocation2], %s1126_s12  ;;  %s310_s21 = scalar_lea.vmem [#allocation4], %s1127_s17 }
  0x1e   : > { %1202 = vmatprep.subr.bf16.mxu1 %v1333_v19  ;;  %v408_v41 = vrot.slane %v399_v39, %v407_v38  ;;  %v412_v43 = vrot.slane %v399_v39, %v411_v40  ;;  %v1352_v56 = vld [vmem:[%s1842_s2 + $0x30] sm:$0xff]   ;;  %v1354_v58 = vld [vmem:[%s1842_s2 + $0x38] sm:$0xff]   ;;  %v1179_v2 = vld.sshfl [vmem:[%s1845_s5] sm:$0x33 pattern:$0x76325410]  ;;  %s1732_s24 = scalar_lea.hbm %s1847_s7, %s1191_s19 }
  0x1f   : > { %1134 = vmatmul.mubr.msk.bf16.vlgmr.msra.gmra.mrb[0].mxu0 %vm352_vm0, %v327_v7  ;;  %v792_v3 = vcombine.high %v1179_v2, %v1179_v2  ;;  %vm1256_vm8 = vmpackc.low %vm352_vm0, %vm352_vm0  ;;  %s993_s25 = sshll.u32 %s310_s21, 4  ;;  %s1195_s12 = sshll.u32 %s1556_s9, 8  ;;  %s1734_s25 = int_to_ptr.vmem [resolvable:$true] %s993_s25 }
  0x20   : > { %1219 = vmatpush3.bf16.msra.mxu0 %v1328_v12  ;;  %s1355_s18 = scalar_lea.vmem %s1734_s25, 32  ;;  %s1485_s17 = smov [#allocation4]  }
  0x21   : > { %1220 = vmatprep.subr.bf16.mxu0 %v1331_v13  ;;  %1203 = vmatpush3.bf16.msra.mxu1 %v1334_v22  ;;  %p1356_p11 = scmp.ne.s32.totalorder %s1734_s25, %s1355_s18  ;;  %s1359_s0 = sshll.u32 %s1485_s17, 4  ;;  %s1360_s0 = int_to_ptr.vmem [resolvable:$false] %s1359_s0 }
  0x22   : > { %1204 = vmatprep.subr.bf16.mxu1 %v1337_v23  ;;  %s1361_s22 = scalar_lea.vmem %s1360_s0, 64  ;;  %p1362_p0 = scmp.lt.s32.totalorder %s1734_s25, %s1360_s0 }
  0x23   : > { %p1357_p12 = pnand %p1356_p11, %p1575_p5  ;;  %p1363_p1 = scmp.lt.s32.totalorder %s1361_s22, %s1355_s18 }
  0x24   : > { %1221 = vmatpush3.bf16.msra.mxu0 %v1332_v16 }
  0x25   : > { %1222 = vmatprep.subr.bf16.mxu0 %v1335_v17  ;;  %1205 = vmatpush3.bf16.msra.mxu1 %v1338_v26  ;;  %v1484_v26 = vmov 1.0   ;;  %p1358_p13 = pneg %p1357_p12  ;;  %p1364_p2 = por %p1363_p1, %p1362_p0 }
  0x26   : > { %1206 = vmatprep.subr.bf16.mxu1 %v1341_v27 }
  0x27   : > { %p1365_p3 = pnand %p1364_p2, %p1358_p13 }
  0x28   : > { %1223 = vmatpush3.bf16.msra.mxu0 %v1336_v20 }
  0x29   : > { %1224 = vmatprep.subr.bf16.mxu0 %v1339_v21  ;;  %1207 = vmatpush3.bf16.msra.mxu1 %v1342_v30 }
  0x2a   : > { %1208 = vmatprep.subr.bf16.mxu1 %v1345_v31 }
  0x2c   : > { %1225 = vmatpush3.bf16.msra.mxu0 %v1340_v24 }
  0x2d   : > { %1226 = vmatprep.subr.bf16.mxu0 %v1343_v25  ;;  %1209 = vmatpush3.bf16.msra.mxu1 %v1346_v33 }
  0x2e   : > { %1210 = vmatprep.subr.bf16.mxu1 %v1349_v34 }
  0x30   : > { %1227 = vmatpush3.bf16.msra.mxu0 %v1344_v28 }
  0x31   : > { %1228 = vmatprep.subr.bf16.mxu0 %v1347_v29  ;;  %1211 = vmatpush3.bf16.msra.mxu1 %v1350_v35 }
  0x34   : > { %1229 = vmatpush3.bf16.msra.mxu0 %v1348_v32 }
  0x35   : > { %1230 = vmatprep.subr.bf16.mxu0 %v1351_v55 }
  0x38   : > { %1231 = vmatpush3.bf16.msra.mxu0 %v1352_v56 }
  0x39   : > { %1232 = vmatprep.subr.bf16.mxu0 %v1353_v57 }
  0x3c   : > { %1233 = vmatpush3.bf16.msra.mxu0 %v1354_v58 }
  0x3d   : > { %1254 = vmatprep.subr.bf16.mxu0 %v1481_v1 }
  0xf2   : > { %v390_v42 = vpop.f32.mrb[0].mxu0 }
  0xf3   : > { %v400_v44 = vmul.f32 2.0, %v390_v42  ;;  %v392_v45 = vpop.f32.mrb[1].mxu0 }
  0xf4   : > { %v401_v46 = vmul.f32 2.0, %v392_v45  ;;  %v394_v47 = vpop.f32.mrb[2].mxu0 }
  0xf5   : > { %v402_v48 = vmul.f32 2.0, %v394_v47  ;;  %v396_v49 = vpop.f32.mrb[3].mxu0  ;;  %v415_v50 = vsub.f32 %v408_v41, %v400_v44 }
  0xf6   : > { %v403_v51 = vmul.f32 2.0, %v396_v49  ;;  %v416_v52 = vsub.f32 %v412_v43, %v401_v46 }
  0xf7   : > { %421 = vmin.index.xlane.f32.xlu1 %v415_v50  ;;  %v417_v53 = vsub.f32 %v408_v41, %v402_v48 }
  0xf8   : > { %431 = vmin.index.xlane.f32.xlu0 %v416_v52  ;;  %v418_v54 = vsub.f32 %v412_v43, %v403_v51 }
  0xfb   : > { %423 = vmin.index.xlane.f32.xlu1 %v417_v53 }
  0xfc   : > { %433 = vmin.index.xlane.f32.xlu0 %v418_v54 }
 0x184   : > { %v422_v59 = vpop.xlane.xlu1 %421 }
 0x185   : > { %v432_v60 = vpop.xlane.xlu0 %431  ;;  %vm425_vm4 = vcmp.eq.s32.totalorder %v420_v61, %v422_v59 }
 0x186   : > { %vm435_vm2 = vcmp.eq.s32.totalorder %v420_v61, %v432_v60 }
 0x188   : > { %v424_v62 = vpop.xlane.xlu1 %423 }
 0x189   : > { %vm426_vm1 = vcmp.eq.s32.totalorder %v420_v61, %v424_v62  ;;  %v434_v63 = vpop.xlane.xlu0 %433 }
 0x18a   : > { %vm436_vm3 = vcmp.eq.s32.totalorder %v420_v61, %v434_v63  ;;  %vm1157_vm6 = vmpackc.low %vm426_vm1, %vm425_vm4 }
 0x18b   : > { %vm1155_vm5 = vmpackc.low %vm436_vm3, %vm435_vm2 }
 0x18c   : > { %1156 = vmatprep.mubr.msk.bf16.mxu1 %vm1155_vm5, %v1480_v0  ;;  %1176 = vmatprep.mubr.msk.bf16.mxu0 %vm1155_vm5, %v1480_v0 }
 0x18d   : > { %1251 = vmatprep.subr.msk.bf16.mxu1 %vm1155_vm5, %v1480_v0  ;;  %1158 = vmatmul.mubr.msk.bf16.vlgmr.msra.gmra.mrb[0].mxu1 %vm1157_vm6, %v1480_v0 }
 0x18e   : > { %1178 = vmatmul.mubr.msk.bf16.vlgmr.msra.gmra.mrb[4].mxu0 %vm1157_vm6, %v1480_v0  ;;  %1253 = vmatpush1.bf16.xpose.msk.msra.mxu1 %vm1157_vm6, %v1480_v0 }
 0x18f   : > { %1247 = vmatprep.mubr.msk.f32.mxu0 %vm1482_vm7, %v1483_v4  ;;  %859 = vmatprep.mubr.f32.mxu1 %v792_v3 }
 0x195   : > { %860 = vmatmul.mubr.f32.vlgmr.msra.gmra.mrb[4].mxu1 %v1179_v2 }
 0x260   : > { %v1212_v7 = vpop.f32.mrb[0].mxu1 }
 0x261   : > { %v1234_v8 = vpop.f32.mrb[4].mxu0  ;;  %v1213_v9 = vpop.f32.mrb[1].mxu1 }
 0x262   : > { %v1214_v10 = vadd.f32 %v1213_v9, %v1212_v7  ;;  %v1235_v11 = vpop.f32.mrb[5].mxu0  ;;  %v1215_v12 = vpop.f32.mrb[2].mxu1 }
 0x263   : > { %v1236_v13 = vadd.f32 %v1235_v11, %v1234_v8  ;;  %v1237_v14 = vpop.f32.mrb[6].mxu0  ;;  %v1216_v15 = vpop.f32.mrb[3].mxu1 }
 0x264   : > { %v1217_v16 = vadd.f32 %v1216_v15, %v1215_v12  ;;  %v1238_v17 = vpop.f32.mrb[7].mxu0 }
 0x265   : > { %v775_v18 = vadd.f32 %v1236_v13, %v1214_v10  ;;  %v1239_v19 = vadd.f32 %v1238_v17, %v1237_v14 }
 0x267   : > { %781 = vst.msk [vmem:[%s1714_s13] sm:$0xff] %vm352_vm0, %v775_v18  ;;  %v868_v20 = vsub.f32 %v1601_v5, %v775_v18  ;;  %v778_v21 = vadd.f32 %v1239_v19, %v1217_v16 }
 0x268   : > { %v861_v5 = vpop.f32.mrb[4].mxu1 }
 0x269   : > { %782 = vst.msk [vmem:[%s1714_s13 + $0x8] sm:$0xff] %vm352_vm0, %v778_v21  ;;  %v869_v22 = vsub.f32 %v1603_v6, %v778_v21  ;;  %v870_v23 = vmul.f32 %v868_v20, %v868_v20  ;;  %v1258_v27 = vtrunc.f32 %v861_v5  ;;  %v863_v28 = vpop.f32.mrb[5].mxu1 }
 0x26b   : > { %v871_v24 = vmul.f32 %v869_v22, %v869_v22  ;;  %v1259_v29 = vcvt.f32.s32 %v1258_v27 }
 0x26d   : > { %v1255_v25 = vpack.c.bf16 %v871_v24, %v870_v23  ;;  %867 = vst.msk [vmem:[%s310_s21] sm:$0x3] %vm866_vm9, %v1259_v29 }
 0x26f   : > { %1257 = vmatpush3.bf16.xpose.msk.msra.mxu0 %vm1256_vm8, %v1255_v25 }
 0x276   : > { %1248 = vmatmul.mubr.msk.f32.vlgmr.msra.gmra.mrb[8].mxu0 %vm352_vm0, %v1484_v26 }
 0x277   : > { %1368 = shalt.err (!%p1365_p3)
}
 0x278   : > { %s1369_s20 = scalar_lea.hbm %s1732_s24, 32  ;;  %s1373_s23 = scalar_lea.hbm %s1847_s7, 64 }
 0x279   : > { %p1370_p4 = scmp.ne.s32.totalorder %s1732_s24, %s1369_s20  ;;  %p1374_p9 = scmp.lt.u32.totalorder %s1732_s24, %s1847_s7 }
 0x27a   : > { %p1375_p10 = scmp.lt.u32.totalorder %s1373_s23, %s1369_s20  ;;  %p1377_p12 = scmp.lt.u32.totalorder %s1369_s20, %s1732_s24 }
 0x27b   : > { %p1371_p7 = pnand %p1370_p4, %p1575_p5 }
 0x27c   : > { %p1376_p11 = por %p1375_p10, %p1374_p9 }
 0x27d   : > { %p1372_p8 = pneg %p1371_p7 }
 0x27e   : > { %p1378_p13 = por %p1377_p12, %p1376_p11 }
 0x280   : > { %p1379_p0 = pnand %p1378_p13, %p1372_p8 }
 0x282   : > { %1382 = shalt.err (!%p1379_p0)
}
 0x283   : > { %1261 = dma.vmem_to_hbm [thread:$0]  (%p1575_p5), %s1734_s25, 32, %s1732_s24, %s1737_s10  }
 0x284   : > { %s1766_s19 = scalar_lea.hbm %s1846_s6, %s1195_s12  ;;  %s1854_s20 = sshll.u32 %s1714_s13, 4  ;;  %s1770_s20 = int_to_ptr.vmem [resolvable:$true] %s1854_s20 }
 0x285   : > { %s955_s21 = scalar_lea.sflag [#allocation3], %s1711_s26  ;;  %s1383_s23 = scalar_lea.vmem %s1770_s20, 256 }
 0x286   : > { %p1384_p1 = scmp.ne.s32.totalorder %s1770_s20, %s1383_s23  ;;  %s1486_s17 = smov [#allocation2]  }
 0x287   : > { %s1387_s24 = sshll.u32 %s1486_s17, 4  ;;  %s1388_s24 = int_to_ptr.vmem [resolvable:$false] %s1387_s24 }
 0x288   : > { %p1385_p2 = pnand %p1384_p1, %p1575_p5  ;;  %s1389_s25 = scalar_lea.vmem %s1388_s24, 512 }
 0x289   : > { %p1390_p4 = scmp.lt.s32.totalorder %s1770_s20, %s1388_s24  ;;  %p1391_p7 = scmp.lt.s32.totalorder %s1389_s25, %s1383_s23 }
 0x28a   : > { %p1386_p3 = pneg %p1385_p2 }
 0x28b   : > { %p1392_p8 = por %p1391_p7, %p1390_p4 }
 0x28d   : > { %p1393_p9 = pnand %p1392_p8, %p1386_p3 }
 0x28f   : > { %1396 = shalt.err (!%p1393_p9)
}
 0x290   : > { %s1397_s13 = scalar_lea.hbm %s1766_s19, 256  ;;  %s1401_s18 = scalar_lea.hbm %s1846_s6, 512 }
 0x291   : > { %p1398_p10 = scmp.ne.s32.totalorder %s1766_s19, %s1397_s13  ;;  %p1402_p13 = scmp.lt.u32.totalorder %s1766_s19, %s1846_s6 }
 0x292   : > { %p1403_p0 = scmp.lt.u32.totalorder %s1401_s18, %s1397_s13  ;;  %p1405_p2 = scmp.lt.u32.totalorder %s1397_s13, %s1766_s19 }
 0x293   : > { %p1399_p11 = pnand %p1398_p10, %p1575_p5 }
 0x294   : > { %p1404_p1 = por %p1403_p0, %p1402_p13 }
 0x295   : > { %p1400_p12 = pneg %p1399_p11 }
 0x296   : > { %p1406_p3 = por %p1405_p2, %p1404_p1 }
 0x298   : > { %p1407_p4 = pnand %p1406_p3, %p1400_p12 }
 0x29a   : > { %1410 = shalt.err (!%p1407_p4)
}
 0x29b   : > { %s1487_s23 = smov 128   ;;  %s1488_s24 = smov 8   ;;  %vm952_vm10 = vcmask 122880  }
 0x29c   : > { %1260 = dma.vmem_to_hbm [thread:$0]  (%p1575_p5), %s1770_s20, 256, %s1766_s19, %s955_s21, %s1487_s23, %s1487_s23, %s1488_s24  }
 0x29d   : > { %s1192_s25 = sshll.u32 %s1556_s9, 4  ;;  %s316_s12 = scalar_lea.vmem [#allocation6], %s1711_s26 }
 0x29e   : > { %s1006_s0 = sshll.u32 %s316_s12, 4  ;;  %s1801_s22 = scalar_lea.hbm %s1848_s8, %s1192_s25  ;;  %s1007_s0 = int_to_ptr.vmem [resolvable:$true] %s1006_s0 }
 0x29f   : > { %s1411_s17 = scalar_lea.vmem %s1007_s0, 16  ;;  %s1489_s19 = smov [#allocation6]  }
 0x2a0   : > { %p1412_p7 = scmp.ne.s32.totalorder %s1007_s0, %s1411_s17  ;;  %s1415_s9 = sshll.u32 %s1489_s19, 4  ;;  %s1416_s9 = int_to_ptr.vmem [resolvable:$false] %s1415_s9 }
 0x2a1   : > { %s1417_s26 = scalar_lea.vmem %s1416_s9, 32  ;;  %p1418_p10 = scmp.lt.s32.totalorder %s1007_s0, %s1416_s9 }
 0x2a2   : > { %p1413_p8 = pnand %p1412_p7, %p1575_p5  ;;  %p1419_p11 = scmp.lt.s32.totalorder %s1417_s26, %s1411_s17 }
 0x2a4   : > { %p1414_p9 = pneg %p1413_p8  ;;  %p1420_p12 = por %p1419_p11, %p1418_p10 }
 0x2a6   : > { %p1421_p13 = pnand %p1420_p12, %p1414_p9 }
 0x349   : > { %v947_v6 = vpop.f32.mrb[8].mxu0 }
 0x34a   : > { %v951_v30 = vmul.f32 0.0390625, %v947_v6  ;;  %v1249_v31 = vpop.f32.mrb[9].mxu0 }
 0x34c   : > { %953 = vst.msk [vmem:[%s316_s12] sm:$0x1] %vm952_vm10, %v951_v30 }
 0x34d   : > { %1424 = shalt.err (!%p1421_p13)
}
 0x34e   : > { %s1425_s20 = scalar_lea.hbm %s1801_s22, 16  ;;  %s1429_s24 = scalar_lea.hbm %s1848_s8, 32 }
 0x34f   : > { %p1426_p0 = scmp.ne.s32.totalorder %s1801_s22, %s1425_s20  ;;  %p1430_p3 = scmp.lt.u32.totalorder %s1801_s22, %s1848_s8 }
 0x350   : > { %p1431_p4 = scmp.lt.u32.totalorder %s1429_s24, %s1425_s20  ;;  %p1433_p8 = scmp.lt.u32.totalorder %s1425_s20, %s1801_s22 }
 0x351   : > { %p1427_p1 = pnand %p1426_p0, %p1575_p5 }
 0x352   : > { %p1432_p7 = por %p1431_p4, %p1430_p3 }
 0x353   : > { %p1428_p2 = pneg %p1427_p1 }
 0x354   : > { %p1434_p9 = por %p1433_p8, %p1432_p7 }
 0x356   : > { %p1435_p10 = pnand %p1434_p9, %p1428_p2 }
 0x358   : > { %1438 = shalt.err (!%p1435_p10)
}
 0x359   : > { %1262 = dma.vmem_to_hbm [thread:$0]  (%p1575_p5), %s1007_s0, 16, %s1801_s22, %s1737_s10  }
 0x35a PF: > { %p1276_p11 = scmp.ge.s32.totalorder %s1477_s30, 2  ;;  %s1018_s13 = sand.u32 1, %s1465_s27  }
 0x35b   : > { %s1019_s18 = scalar_lea.sflag [#allocation3], %s1018_s13 }
 0x35c   : > { %p1267_p12 = pnand %p1276_p11, %p1579_p6 }
 0x35e   : > { %1456 = dma.done.wait (!%p1267_p12), %s1019_s18, 256  }
 0x35f   : > { %1458 = vsyncadd (!%p1267_p12), %s1019_s18, 4294967040  ;;  %s1855_s17 = sadd.s32 4294967294, %s1477_s30  }
 0x360   : > { %s1027_s19 = sand.u32 1, %s1855_s17  }
 0x361   : > { %s1028_s9 = scalar_lea.sflag [#allocation5], %s1027_s19 }
 0x362   : > { %1460 = dma.done.wait (!%p1267_p12), %s1028_s9, 48  }
 0x363   : > { %1462 = vsyncadd (!%p1267_p12), %s1028_s9, 4294967248  ;;  %p22_p5 = scmp.ge.s32.totalorder %s1560_s11, 4   ;;  %s1856_s27 = smov %s1469_s28 }
 0x364   : > { %s1857_s28 = smov %s1473_s29  ;;  %s1858_s29 = smov %s1573_s14 }
 0x365   : > { %s1859_s30 = smov %s1560_s11  ;;  %24 = sbr.rel (!%p22_p5) target bundleno = 7 (0x7), region = 111 }
 0x36c   :  { %1041 = vsyncpa [#allocation3], 1 }
 0x36d   :  { %1043 = vsyncpa [#allocation3 + $0x1], 1 }
 0x36e   :  { %1044 = vsyncpa [#allocation5], 1 }
 0x36f   :  { %1046 = vsyncpa [#allocation5 + $0x1], 1 }

</bundles_post_ra>
